<compile_context>
chip_gen: v6e
topology: v6e:2x2x1
jax: 0.10.0
libtpu: 0.0.40
codegen_flags: <defaults>
</compile_context>

<pallas_src>
import jax
import jax.numpy as jnp
from jax.experimental import pallas as pl
from jax.experimental.pallas import tpu as pltpu

NEG_SLOPE = 0.01   # nn.LeakyReLU default negative_slope
EPS = 1e-5         # nn.GroupNorm default eps
NUM_GROUPS = 2
LANE = 128


def _leaky_relu(x):
    return jnp.where(x > 0, x, NEG_SLOPE * x)


def temperature_mlp_kernel(x_ref,
                           w1_ref, b1_ref, w2_ref, b2_ref, w3_ref, b3_ref,
                           w4_ref, b4_ref, w5_ref, b5_ref, out_ref):
    x = x_ref[...]                       # (TB, F) float32
    TB, F = x.shape
    G = F // NUM_GROUPS                  # channels per group

    # ---- GroupNorm(2, F) on a 2-D (N, C) input, affine already folded into
    # layer 1.  Full-width masked statistics (biased variance): stays on the
    # VPU lanes, no sub-128-lane slices and no concatenate copy. ----
    col = jax.lax.broadcasted_iota(jnp.int32, (TB, F), 1)
    in_g0 = col < G
    inv_g = 1.0 / G
    s0 = jnp.sum(jnp.where(in_g0, x, 0.0), axis=-1, keepdims=True)
    s1 = jnp.sum(jnp.where(in_g0, 0.0, x), axis=-1, keepdims=True)
    mean = jnp.where(in_g0, s0 * inv_g, s1 * inv_g)          # (TB, F)
    d = x - mean
    d2 = d * d
    v0 = jnp.sum(jnp.where(in_g0, d2, 0.0), axis=-1, keepdims=True)
    v1 = jnp.sum(jnp.where(in_g0, 0.0, d2), axis=-1, keepdims=True)
    var = jnp.where(in_g0, v0 * inv_g, v1 * inv_g)
    xn = d * jax.lax.rsqrt(var + EPS)                        # f32

    # ---- Dropout1d(0.5): identity in eval/inference mode. ----
    # TODO(synk): training-mode channel dropout (pltpu PRNG mask) not implemented.

    # ---- MLP hot path: 5 Linear layers + LeakyReLU on the MXU.
    # bf16 operands, f32 accumulation; elementwise math stays f32. ----
    def dense(h, w_ref, b_ref):
        return jnp.dot(h.astype(jnp.bfloat16), w_ref[...],
                       preferred_element_type=jnp.float32) + b_ref[...]

    h = _leaky_relu(dense(xn, w1_ref, b1_ref))
    h = _leaky_relu(dense(h, w2_ref, b2_ref))
    h = _leaky_relu(dense(h, w3_ref, b3_ref))
    h = _leaky_relu(dense(h, w4_ref, b4_ref))
    out_ref[...] = dense(h, w5_ref, b5_ref)


def _prepare_kernel_params(params):
    """Fold GroupNorm affine into layer 1, lane-pad layers 1 & 5, cast to bf16.

    (xn*gamma + beta) @ W1 + b1 == xn @ (diag(gamma) @ W1) + (beta @ W1 + b1)
    Layer-1 columns (and layer-2 rows) zero-padded to a lane multiple: exact,
    since LeakyReLU(0) = 0 and the padded W2 rows are zero.
    """
    gamma = params["gamma"].reshape(-1).astype(jnp.float32)     # (F,)
    beta = params["beta"].reshape(-1).astype(jnp.float32)       # (F,)
    w1 = params["w1"].astype(jnp.float32)
    b1 = params["b1"].astype(jnp.float32)
    w1f = gamma[:, None] * w1
    b1f = beta[None, :] @ w1 + b1

    # Lane-pad layer-1 width (64 -> 128) so the first hidden activation and the
    # layer-2 contraction dim are lane-dense; pad layer-2 rows with zeros.
    h1 = w1f.shape[1]
    h1p = -(-h1 // LANE) * LANE
    w1f = jnp.pad(w1f, ((0, 0), (0, h1p - h1)))
    b1f = jnp.pad(b1f, ((0, 0), (0, h1p - h1)))
    w2 = jnp.pad(params["w2"].astype(jnp.float32), ((0, h1p - h1), (0, 0)))

    # Lane-pad the final (num_classes) layer so the output store is lane-dense.
    num_classes = params["w5"].shape[1]
    cpad = -(-num_classes // LANE) * LANE
    w5p = jnp.pad(params["w5"].astype(jnp.float32),
                  ((0, 0), (0, cpad - num_classes)))
    b5p = jnp.pad(params["b5"].astype(jnp.float32),
                  ((0, 0), (0, cpad - num_classes)))

    flat = [
        w1f.astype(jnp.bfloat16), b1f,
        w2.astype(jnp.bfloat16), params["b2"].astype(jnp.float32),
        params["w3"].astype(jnp.bfloat16), params["b3"].astype(jnp.float32),
        params["w4"].astype(jnp.bfloat16), params["b4"].astype(jnp.float32),
        w5p.astype(jnp.bfloat16), b5p,
    ]
    return flat, num_classes, cpad


def temperature_mlp(x, params, *, batch_tile=512):
    """x: (B, num_features) float32. params: dict of weights (see init_params)."""
    B, F = x.shape
    assert F % NUM_GROUPS == 0, "num_features must be divisible by 2 (GroupNorm(2, F))"
    flat, num_classes, cpad = _prepare_kernel_params(params)

    # Batch tile: 512 rows for large batches (amortizes grid-step overhead,
    # multiple of 256 for v6e/v7x MXU height and 128 for v5e); shrink to a
    # sublane-aligned tile for small demo batches.
    TB = batch_tile
    if B < TB:
        TB = max(8, -(-B // 8) * 8)
    B_pad = -(-B // TB) * TB

    xp = x.astype(jnp.float32)
    if B_pad != B:
        xp = jnp.pad(xp, ((0, B_pad - B), (0, 0)))

    grid = (B_pad // TB,)

    def resident(a):
        # Full-extent block, constant index_map -> stays VMEM-resident across steps.
        return pl.BlockSpec(a.shape, lambda i: (0,) * a.ndim)

    in_specs = [pl.BlockSpec((TB, F), lambda i: (i, 0))] + [resident(a) for a in flat]
    out_specs = pl.BlockSpec((TB, cpad), lambda i: (i, 0))

    out = pl.pallas_call(
        temperature_mlp_kernel,
        out_shape=jax.ShapeDtypeStruct((B_pad, cpad), jnp.float32),
        grid=grid,
        in_specs=in_specs,
        out_specs=out_specs,
        compiler_params=pltpu.CompilerParams(
            dimension_semantics=("parallel",)),  # v7x: shard batch over both TCs
    )(xp, *flat)
    return out[:B, :num_classes]


def init_params(key, num_features, num_classes=5):
    """Deterministic synthetic parameters matching the module's shapes."""
    dims = [num_features, 64, 256, 512, 128, num_classes]
    keys = jax.random.split(key, 2 * (len(dims) - 1) + 2)
    params = {
        # Non-trivial GroupNorm affine so the folding path is actually exercised.
        "gamma": 1.0 + 0.1 * jax.random.normal(keys[-2], (num_features,), jnp.float32),
        "beta": 0.1 * jax.random.normal(keys[-1], (num_features,), jnp.float32),
    }
    for i in range(len(dims) - 1):
        fan_in, fan_out = dims[i], dims[i + 1]
        scale = 1.0 / jnp.sqrt(jnp.float32(fan_in))
        # stored as (in, out) == PyTorch weight.T
        params[f"w{i+1}"] = scale * jax.random.normal(
            keys[2 * i], (fan_in, fan_out), jnp.float32)
        params[f"b{i+1}"] = scale * jax.random.normal(
            keys[2 * i + 1], (1, fan_out), jnp.float32)
    return params


def reference_forward(x, params):
    """Pure-JAX f32 reference of TemperatureMLP.forward (eval mode)."""
    B, F = x.shape
    G = F // NUM_GROUPS
    xg = x.reshape(B, NUM_GROUPS, G)
    m = jnp.mean(xg, axis=-1, keepdims=True)
    v = jnp.mean((xg - m) ** 2, axis=-1, keepdims=True)
    xn = ((xg - m) / jnp.sqrt(v + EPS)).reshape(B, F)
    xn = xn * params["gamma"].reshape(1, F) + params["beta"].reshape(1, F)
    h = xn
    for i in range(1, 5):
        h = h @ params[f"w{i}"] + params[f"b{i}"]
        h = jnp.where(h > 0, h, NEG_SLOPE * h)
    return h @ params["w5"] + params["b5"]


def reference_forward_bf16(x, params):
    """Reference matching the kernel's numerics (bf16 operands, f32 accum)."""
    flat, num_classes, _ = _prepare_kernel_params(params)
    w1, b1, w2, b2, w3, b3, w4, b4, w5, b5 = flat
    B, F = x.shape
    G = F // NUM_GROUPS
    xg = x.reshape(B, NUM_GROUPS, G)
    m = jnp.mean(xg, axis=-1, keepdims=True)
    v = jnp.mean((xg - m) ** 2, axis=-1, keepdims=True)
    xn = ((xg - m) * jax.lax.rsqrt(v + EPS)).reshape(B, F)

    def dense(h, w, b):
        return jnp.dot(h.astype(jnp.bfloat16), w,
                       preferred_element_type=jnp.float32) + b

    h = _leaky_relu(dense(xn, w1, b1))
    h = _leaky_relu(dense(h, w2, b2))
    h = _leaky_relu(dense(h, w3, b3))
    h = _leaky_relu(dense(h, w4, b4))
    return dense(h, w5, b5)[:, :num_classes]


if __name__ == "__main__":
    B, F, C = 8, 32, 5
    key = jax.random.PRNGKey(0)
    k_x, k_p = jax.random.split(key)
    x = jax.random.normal(k_x, (B, F), jnp.float32)
    params = init_params(k_p, F, C)

    out = jax.block_until_ready(temperature_mlp(x, params))
    assert out.shape == (B, C), out.shape

    # Tight check vs. a reference with identical numerics (bf16 dots, f32 accum).
    ref_bf16 = reference_forward_bf16(x, params)
    assert jnp.allclose(out, ref_bf16, atol=5e-3, rtol=5e-3), (
        float(jnp.max(jnp.abs(out - ref_bf16))))

    # Looser check vs. the full-f32 module semantics (bf16 operand rounding).
    ref_f32 = reference_forward(x, params)
    assert jnp.allclose(out, ref_f32, atol=5e-2, rtol=5e-2), (
        float(jnp.max(jnp.abs(out - ref_f32))))

    print("KERNEL_OK")
</pallas_src>

<mosaic_0001>
module attributes {stable_mosaic.version = 11 : i64} {
  func.func @temperature_mlp_kernel(%arg0: i32, %arg1: memref<8x32xf32, #tpu.memory_space<vmem>>, %arg2: memref<32x128xbf16, #tpu.memory_space<vmem>>, %arg3: memref<1x128xf32, #tpu.memory_space<vmem>>, %arg4: memref<128x256xbf16, #tpu.memory_space<vmem>>, %arg5: memref<1x256xf32, #tpu.memory_space<vmem>>, %arg6: memref<256x512xbf16, #tpu.memory_space<vmem>>, %arg7: memref<1x512xf32, #tpu.memory_space<vmem>>, %arg8: memref<512x128xbf16, #tpu.memory_space<vmem>>, %arg9: memref<1x128xf32, #tpu.memory_space<vmem>>, %arg10: memref<128x128xbf16, #tpu.memory_space<vmem>>, %arg11: memref<1x128xf32, #tpu.memory_space<vmem>>, %arg12: memref<8x128xf32, #tpu.memory_space<vmem>>) attributes {dimension_semantics = [#tpu.dimension_semantics<parallel>], iteration_bounds = array<i64: 1>, scalar_prefetch = 0 : i64, scratch_operands = 0 : i64, tpu.core_type = #tpu.core_type<tc>, window_params = [{transform_indices = @transform_0, window_bounds = array<i64: 8, 32>}, {pipeline_mode = #tpu.pipeline_mode<synchronous>, transform_indices = @transform_1, window_bounds = array<i64: 32, 128>}, {pipeline_mode = #tpu.pipeline_mode<synchronous>, transform_indices = @transform_2, window_bounds = array<i64: 1, 128>}, {pipeline_mode = #tpu.pipeline_mode<synchronous>, transform_indices = @transform_3, window_bounds = array<i64: 128, 256>}, {pipeline_mode = #tpu.pipeline_mode<synchronous>, transform_indices = @transform_4, window_bounds = array<i64: 1, 256>}, {pipeline_mode = #tpu.pipeline_mode<synchronous>, transform_indices = @transform_5, window_bounds = array<i64: 256, 512>}, {pipeline_mode = #tpu.pipeline_mode<synchronous>, transform_indices = @transform_6, window_bounds = array<i64: 1, 512>}, {pipeline_mode = #tpu.pipeline_mode<synchronous>, transform_indices = @transform_7, window_bounds = array<i64: 512, 128>}, {pipeline_mode = #tpu.pipeline_mode<synchronous>, transform_indices = @transform_8, window_bounds = array<i64: 1, 128>}, {pipeline_mode = #tpu.pipeline_mode<synchronous>, transform_indices = @transform_9, window_bounds = array<i64: 128, 128>}, {pipeline_mode = #tpu.pipeline_mode<synchronous>, transform_indices = @transform_10, window_bounds = array<i64: 1, 128>}, {transform_indices = @transform_11, window_bounds = array<i64: 8, 128>}]} {
    %c0 = arith.constant 0 : index
    %c0_0 = arith.constant 0 : index
    %0 = vector.load %arg1[%c0, %c0_0] : memref<8x32xf32, #tpu.memory_space<vmem>>, vector<8x32xf32>
    %1 = tpu.iota {dimensions = array<i32: 1>} : vector<8x32xi32>
    %c16_i32 = arith.constant 16 : i32
    %2 = vector.broadcast %c16_i32 : i32 to vector<8x32xi32>
    %3 = arith.cmpi slt, %1, %2 : vector<8x32xi32>
    %cst = arith.constant 0.000000e+00 : f32
    %4 = vector.broadcast %cst : f32 to vector<8x32xf32>
    %5 = arith.select %3, %0, %4 : vector<8x32xi1>, vector<8x32xf32>
    %cst_1 = arith.constant dense<0.000000e+00> : vector<8xf32>
    %6 = vector.multi_reduction <add>, %5, %cst_1 [1] : vector<8x32xf32> to vector<8xf32>
    %7 = vector.shape_cast %6 : vector<8xf32> to vector<8x1xf32>
    %cst_2 = arith.constant 0.000000e+00 : f32
    %8 = vector.broadcast %cst_2 : f32 to vector<8x32xf32>
    %9 = arith.select %3, %8, %0 : vector<8x32xi1>, vector<8x32xf32>
    %cst_3 = arith.constant dense<0.000000e+00> : vector<8xf32>
    %10 = vector.multi_reduction <add>, %9, %cst_3 [1] : vector<8x32xf32> to vector<8xf32>
    %11 = vector.shape_cast %10 : vector<8xf32> to vector<8x1xf32>
    %cst_4 = arith.constant 6.250000e-02 : f32
    %12 = vector.broadcast %cst_4 : f32 to vector<8x1xf32>
    %13 = arith.mulf %7, %12 : vector<8x1xf32>
    %cst_5 = arith.constant 6.250000e-02 : f32
    %14 = vector.broadcast %cst_5 : f32 to vector<8x1xf32>
    %15 = arith.mulf %11, %14 : vector<8x1xf32>
    %16 = vector.shape_cast %13 : vector<8x1xf32> to vector<8x1xf32>
    %17 = vector.broadcast %16 : vector<8x1xf32> to vector<8x32xf32>
    %18 = vector.shape_cast %15 : vector<8x1xf32> to vector<8x1xf32>
    %19 = vector.broadcast %18 : vector<8x1xf32> to vector<8x32xf32>
    %20 = arith.select %3, %17, %19 : vector<8x32xi1>, vector<8x32xf32>
    %21 = arith.subf %0, %20 : vector<8x32xf32>
    %22 = arith.mulf %21, %21 : vector<8x32xf32>
    %cst_6 = arith.constant 0.000000e+00 : f32
    %23 = vector.broadcast %cst_6 : f32 to vector<8x32xf32>
    %24 = arith.select %3, %22, %23 : vector<8x32xi1>, vector<8x32xf32>
    %cst_7 = arith.constant dense<0.000000e+00> : vector<8xf32>
    %25 = vector.multi_reduction <add>, %24, %cst_7 [1] : vector<8x32xf32> to vector<8xf32>
    %26 = vector.shape_cast %25 : vector<8xf32> to vector<8x1xf32>
    %cst_8 = arith.constant 0.000000e+00 : f32
    %27 = vector.broadcast %cst_8 : f32 to vector<8x32xf32>
    %28 = arith.select %3, %27, %22 : vector<8x32xi1>, vector<8x32xf32>
    %cst_9 = arith.constant dense<0.000000e+00> : vector<8xf32>
    %29 = vector.multi_reduction <add>, %28, %cst_9 [1] : vector<8x32xf32> to vector<8xf32>
    %30 = vector.shape_cast %29 : vector<8xf32> to vector<8x1xf32>
    %cst_10 = arith.constant 6.250000e-02 : f32
    %31 = vector.broadcast %cst_10 : f32 to vector<8x1xf32>
    %32 = arith.mulf %26, %31 : vector<8x1xf32>
    %cst_11 = arith.constant 6.250000e-02 : f32
    %33 = vector.broadcast %cst_11 : f32 to vector<8x1xf32>
    %34 = arith.mulf %30, %33 : vector<8x1xf32>
    %35 = vector.shape_cast %32 : vector<8x1xf32> to vector<8x1xf32>
    %36 = vector.broadcast %35 : vector<8x1xf32> to vector<8x32xf32>
    %37 = vector.shape_cast %34 : vector<8x1xf32> to vector<8x1xf32>
    %38 = vector.broadcast %37 : vector<8x1xf32> to vector<8x32xf32>
    %39 = arith.select %3, %36, %38 : vector<8x32xi1>, vector<8x32xf32>
    %cst_12 = arith.constant 9.99999974E-6 : f32
    %40 = vector.broadcast %cst_12 : f32 to vector<8x32xf32>
    %41 = arith.addf %39, %40 : vector<8x32xf32>
    %42 = math.rsqrt %41 : vector<8x32xf32>
    %43 = arith.mulf %21, %42 : vector<8x32xf32>
    %44 = arith.truncf %43 : vector<8x32xf32> to vector<8x32xbf16>
    %c0_13 = arith.constant 0 : index
    %c0_14 = arith.constant 0 : index
    %45 = vector.load %arg2[%c0_13, %c0_14] : memref<32x128xbf16, #tpu.memory_space<vmem>>, vector<32x128xbf16>
    %cst_15 = arith.constant dense<0.000000e+00> : vector<8x128xf32>
    %46 = tpu.matmul %44, %45, %cst_15 {dimension_numbers = #tpu.dot_dimension_numbers<[1], [0], [0], [1], [0, 0, 1, 1], [], []>} : vector<8x32xbf16>, vector<32x128xbf16>, vector<8x128xf32> -> vector<8x128xf32>
    %c0_16 = arith.constant 0 : index
    %c0_17 = arith.constant 0 : index
    %47 = vector.load %arg3[%c0_16, %c0_17] : memref<1x128xf32, #tpu.memory_space<vmem>>, vector<1x128xf32>
    %48 = vector.broadcast %47 : vector<1x128xf32> to vector<8x128xf32>
    %49 = arith.addf %46, %48 : vector<8x128xf32>
    %cst_18 = arith.constant 0.000000e+00 : f32
    %50 = vector.broadcast %cst_18 : f32 to vector<8x128xf32>
    %51 = arith.cmpf ogt, %49, %50 : vector<8x128xf32>
    %cst_19 = arith.constant 0.00999999977 : f32
    %52 = vector.broadcast %cst_19 : f32 to vector<8x128xf32>
    %53 = arith.mulf %52, %49 : vector<8x128xf32>
    %54 = arith.select %51, %49, %53 : vector<8x128xi1>, vector<8x128xf32>
    %55 = arith.truncf %54 : vector<8x128xf32> to vector<8x128xbf16>
    %c0_20 = arith.constant 0 : index
    %c0_21 = arith.constant 0 : index
    %56 = vector.load %arg4[%c0_20, %c0_21] : memref<128x256xbf16, #tpu.memory_space<vmem>>, vector<128x256xbf16>
    %cst_22 = arith.constant dense<0.000000e+00> : vector<8x256xf32>
    %57 = tpu.matmul %55, %56, %cst_22 {dimension_numbers = #tpu.dot_dimension_numbers<[1], [0], [0], [1], [0, 0, 1, 1], [], []>} : vector<8x128xbf16>, vector<128x256xbf16>, vector<8x256xf32> -> vector<8x256xf32>
    %c0_23 = arith.constant 0 : index
    %c0_24 = arith.constant 0 : index
    %58 = vector.load %arg5[%c0_23, %c0_24] : memref<1x256xf32, #tpu.memory_space<vmem>>, vector<1x256xf32>
    %59 = vector.broadcast %58 : vector<1x256xf32> to vector<8x256xf32>
    %60 = arith.addf %57, %59 : vector<8x256xf32>
    %cst_25 = arith.constant 0.000000e+00 : f32
    %61 = vector.broadcast %cst_25 : f32 to vector<8x256xf32>
    %62 = arith.cmpf ogt, %60, %61 : vector<8x256xf32>
    %cst_26 = arith.constant 0.00999999977 : f32
    %63 = vector.broadcast %cst_26 : f32 to vector<8x256xf32>
    %64 = arith.mulf %63, %60 : vector<8x256xf32>
    %65 = arith.select %62, %60, %64 : vector<8x256xi1>, vector<8x256xf32>
    %66 = arith.truncf %65 : vector<8x256xf32> to vector<8x256xbf16>
    %c0_27 = arith.constant 0 : index
    %c0_28 = arith.constant 0 : index
    %67 = vector.load %arg6[%c0_27, %c0_28] : memref<256x512xbf16, #tpu.memory_space<vmem>>, vector<256x512xbf16>
    %cst_29 = arith.constant dense<0.000000e+00> : vector<8x512xf32>
    %68 = tpu.matmul %66, %67, %cst_29 {dimension_numbers = #tpu.dot_dimension_numbers<[1], [0], [0], [1], [0, 0, 1, 1], [], []>} : vector<8x256xbf16>, vector<256x512xbf16>, vector<8x512xf32> -> vector<8x512xf32>
    %c0_30 = arith.constant 0 : index
    %c0_31 = arith.constant 0 : index
    %69 = vector.load %arg7[%c0_30, %c0_31] : memref<1x512xf32, #tpu.memory_space<vmem>>, vector<1x512xf32>
    %70 = vector.broadcast %69 : vector<1x512xf32> to vector<8x512xf32>
    %71 = arith.addf %68, %70 : vector<8x512xf32>
    %cst_32 = arith.constant 0.000000e+00 : f32
    %72 = vector.broadcast %cst_32 : f32 to vector<8x512xf32>
    %73 = arith.cmpf ogt, %71, %72 : vector<8x512xf32>
    %cst_33 = arith.constant 0.00999999977 : f32
    %74 = vector.broadcast %cst_33 : f32 to vector<8x512xf32>
    %75 = arith.mulf %74, %71 : vector<8x512xf32>
    %76 = arith.select %73, %71, %75 : vector<8x512xi1>, vector<8x512xf32>
    %77 = arith.truncf %76 : vector<8x512xf32> to vector<8x512xbf16>
    %c0_34 = arith.constant 0 : index
    %c0_35 = arith.constant 0 : index
    %78 = vector.load %arg8[%c0_34, %c0_35] : memref<512x128xbf16, #tpu.memory_space<vmem>>, vector<512x128xbf16>
    %cst_36 = arith.constant dense<0.000000e+00> : vector<8x128xf32>
    %79 = tpu.matmul %77, %78, %cst_36 {dimension_numbers = #tpu.dot_dimension_numbers<[1], [0], [0], [1], [0, 0, 1, 1], [], []>} : vector<8x512xbf16>, vector<512x128xbf16>, vector<8x128xf32> -> vector<8x128xf32>
    %c0_37 = arith.constant 0 : index
    %c0_38 = arith.constant 0 : index
    %80 = vector.load %arg9[%c0_37, %c0_38] : memref<1x128xf32, #tpu.memory_space<vmem>>, vector<1x128xf32>
    %81 = vector.broadcast %80 : vector<1x128xf32> to vector<8x128xf32>
    %82 = arith.addf %79, %81 : vector<8x128xf32>
    %cst_39 = arith.constant 0.000000e+00 : f32
    %83 = vector.broadcast %cst_39 : f32 to vector<8x128xf32>
    %84 = arith.cmpf ogt, %82, %83 : vector<8x128xf32>
    %cst_40 = arith.constant 0.00999999977 : f32
    %85 = vector.broadcast %cst_40 : f32 to vector<8x128xf32>
    %86 = arith.mulf %85, %82 : vector<8x128xf32>
    %87 = arith.select %84, %82, %86 : vector<8x128xi1>, vector<8x128xf32>
    %88 = arith.truncf %87 : vector<8x128xf32> to vector<8x128xbf16>
    %c0_41 = arith.constant 0 : index
    %c0_42 = arith.constant 0 : index
    %89 = vector.load %arg10[%c0_41, %c0_42] : memref<128x128xbf16, #tpu.memory_space<vmem>>, vector<128x128xbf16>
    %cst_43 = arith.constant dense<0.000000e+00> : vector<8x128xf32>
    %90 = tpu.matmul %88, %89, %cst_43 {dimension_numbers = #tpu.dot_dimension_numbers<[1], [0], [0], [1], [0, 0, 1, 1], [], []>} : vector<8x128xbf16>, vector<128x128xbf16>, vector<8x128xf32> -> vector<8x128xf32>
    %c0_44 = arith.constant 0 : index
    %c0_45 = arith.constant 0 : index
    %91 = vector.load %arg11[%c0_44, %c0_45] : memref<1x128xf32, #tpu.memory_space<vmem>>, vector<1x128xf32>
    %92 = vector.broadcast %91 : vector<1x128xf32> to vector<8x128xf32>
    %93 = arith.addf %90, %92 : vector<8x128xf32>
    %c0_46 = arith.constant 0 : index
    %c0_47 = arith.constant 0 : index
    %94 = vector.load %arg12[%c0_46, %c0_47] : memref<8x128xf32, #tpu.memory_space<vmem>>, vector<8x128xf32>
    tpu.vector_store %arg12[%c0_46, %c0_47], %93 {strides = array<i32>} : memref<8x128xf32, #tpu.memory_space<vmem>>, vector<8x128xf32>,
    return
  }
  func.func @transform_0(%arg0: i32) -> (i32, i32) {
    %c0_i32 = arith.constant 0 : i32
    %c0_i32_0 = arith.constant 0 : i32
    return %arg0, %c0_i32 : i32, i32
  }
  func.func @transform_1(%arg0: i32) -> (i32, i32) {
    %c0_i32 = arith.constant 0 : i32
    %c0_i32_0 = arith.constant 0 : i32
    %c0_i32_1 = arith.constant 0 : i32
    return %c0_i32, %c0_i32_0 : i32, i32
  }
  func.func @transform_2(%arg0: i32) -> (i32, i32) {
    %c0_i32 = arith.constant 0 : i32
    %c0_i32_0 = arith.constant 0 : i32
    %c0_i32_1 = arith.constant 0 : i32
    return %c0_i32, %c0_i32_0 : i32, i32
  }
  func.func @transform_3(%arg0: i32) -> (i32, i32) {
    %c0_i32 = arith.constant 0 : i32
    %c0_i32_0 = arith.constant 0 : i32
    %c0_i32_1 = arith.constant 0 : i32
    return %c0_i32, %c0_i32_0 : i32, i32
  }
  func.func @transform_4(%arg0: i32) -> (i32, i32) {
    %c0_i32 = arith.constant 0 : i32
    %c0_i32_0 = arith.constant 0 : i32
    %c0_i32_1 = arith.constant 0 : i32
    return %c0_i32, %c0_i32_0 : i32, i32
  }
  func.func @transform_5(%arg0: i32) -> (i32, i32) {
    %c0_i32 = arith.constant 0 : i32
    %c0_i32_0 = arith.constant 0 : i32
    %c0_i32_1 = arith.constant 0 : i32
    return %c0_i32, %c0_i32_0 : i32, i32
  }
  func.func @transform_6(%arg0: i32) -> (i32, i32) {
    %c0_i32 = arith.constant 0 : i32
    %c0_i32_0 = arith.constant 0 : i32
    %c0_i32_1 = arith.constant 0 : i32
    return %c0_i32, %c0_i32_0 : i32, i32
  }
  func.func @transform_7(%arg0: i32) -> (i32, i32) {
    %c0_i32 = arith.constant 0 : i32
    %c0_i32_0 = arith.constant 0 : i32
    %c0_i32_1 = arith.constant 0 : i32
    return %c0_i32, %c0_i32_0 : i32, i32
  }
  func.func @transform_8(%arg0: i32) -> (i32, i32) {
    %c0_i32 = arith.constant 0 : i32
    %c0_i32_0 = arith.constant 0 : i32
    %c0_i32_1 = arith.constant 0 : i32
    return %c0_i32, %c0_i32_0 : i32, i32
  }
  func.func @transform_9(%arg0: i32) -> (i32, i32) {
    %c0_i32 = arith.constant 0 : i32
    %c0_i32_0 = arith.constant 0 : i32
    %c0_i32_1 = arith.constant 0 : i32
    return %c0_i32, %c0_i32_0 : i32, i32
  }
  func.func @transform_10(%arg0: i32) -> (i32, i32) {
    %c0_i32 = arith.constant 0 : i32
    %c0_i32_0 = arith.constant 0 : i32
    %c0_i32_1 = arith.constant 0 : i32
    return %c0_i32, %c0_i32_0 : i32, i32
  }
  func.func @transform_11(%arg0: i32) -> (i32, i32) {
    %c0_i32 = arith.constant 0 : i32
    %c0_i32_0 = arith.constant 0 : i32
    return %arg0, %c0_i32 : i32, i32
  }
}

</mosaic_0001>

<bundles_post_ra>
// kernel: tpu_custom_call.1
= control target key start
LH: loop header
LB: loop body
LE: loop exit
PB: predicated region body
PF: predicated region fallthrough
CT: control target
= control target key end

     0   :  { %16 = vsyncpa [#allocation3], 0  ;;  %s2063_s0 = inlined_call_operand.hbm [shape: f32[8,32], index: 0, kind: input, shape index: {}]   ;;  %s2064_s1 = inlined_call_operand.hbm [shape: bf16[32,128], index: 1, kind: input, shape index: {}]   ;;  %s2065_s2 = inlined_call_operand.vmem [shape: f32[1,128], index: 2, kind: input, shape index: {}]   ;;  %s2066_s3 = inlined_call_operand.hbm [shape: bf16[128,256], index: 3, kind: input, shape index: {}]   ;;  %s2067_s4 = inlined_call_operand.vmem [shape: f32[1,256], index: 4, kind: input, shape index: {}]   ;;  %s2068_s5 = inlined_call_operand.hbm [shape: bf16[256,512], index: 5, kind: input, shape index: {}]   ;;  %s2069_s6 = inlined_call_operand.vmem [shape: f32[1,512], index: 6, kind: input, shape index: {}]   ;;  %s2070_s7 = inlined_call_operand.hbm [shape: bf16[512,128], index: 7, kind: input, shape index: {}]   ;;  %s2071_s8 = inlined_call_operand.vmem [shape: f32[1,128], index: 8, kind: input, shape index: {}]   ;;  %s2072_s9 = inlined_call_operand.hbm [shape: bf16[128,128], index: 9, kind: input, shape index: {}]   ;;  %s2073_s10 = inlined_call_operand.vmem [shape: f32[1,128], index: 10, kind: input, shape index: {}]   ;;  %s2074_s11 = inlined_call_operand.hbm [shape: f32[8,128], index: 11, kind: output, shape index: {}]  }
   0x1   :  { %17 = vsyncpa [#allocation6], 0 }
   0x2   :  { %18 = vsyncpa [#allocation9], 0 }
   0x3   :  { %19 = vsyncpa [#allocation12], 0 }
   0x4   :  { %20 = vsyncpa [#allocation4], 0  ;;  %s1901_s17 = smov [#allocation5]  }
   0x5   :  { %s36_s18 = sshll.u32 %s1901_s17, 4  ;;  %s37_s18 = int_to_ptr.vmem [resolvable:$true] %s36_s18 }
   0x6   :  { %s1759_s19 = scalar_lea.vmem %s37_s18, 256  ;;  %p1764_p1 = scmp.lt.s32.totalorder %s37_s18, %s37_s18 }
   0x7   :  { %p1760_p0 = scmp.ne.s32.totalorder %s37_s18, %s1759_s19  ;;  %p1765_p2 = scmp.lt.s32.totalorder %s1759_s19, %s1759_s19 }
   0x9   :  { %p1766_p3 = por %p1765_p2, %p1764_p1 }
   0xb   :  { %p1767_p4 = pnand %p1766_p3, %p1760_p0 }
   0xd   :  { %1770 = shalt.err (!%p1767_p4)
}
   0xe   :  { %s1902_s20 = smov 64   ;;  %s1903_s21 = smov 4  }
   0xf   :  { %42 = dma.hbm_to_vmem [thread:$0]  %s2064_s1, 256, %s37_s18, [#allocation6], %s1902_s20, %s1902_s20, %s1903_s21  }
  0x10   :  { %s1904_s24 = smov [#allocation8]  }
  0x11   :  { %s64_s25 = sshll.u32 %s1904_s24, 4  ;;  %s65_s25 = int_to_ptr.vmem [resolvable:$true] %s64_s25 }
  0x12   :  { %s1779_s26 = scalar_lea.vmem %s65_s25, 8192  ;;  %p1784_p6 = scmp.lt.s32.totalorder %s65_s25, %s65_s25 }
  0x13   :  { %p1780_p5 = scmp.ne.s32.totalorder %s65_s25, %s1779_s26  ;;  %p1785_p7 = scmp.lt.s32.totalorder %s1779_s26, %s1779_s26 }
  0x15   :  { %p1786_p8 = por %p1785_p7, %p1784_p6 }
  0x17   :  { %p1787_p9 = pnand %p1786_p8, %p1780_p5 }
  0x19   :  { %1790 = shalt.err (!%p1787_p9)
}
  0x1a   :  { %s1905_s27 = smov 256   ;;  %s1906_s28 = smov 16  }
  0x1b   :  { %70 = dma.hbm_to_vmem [thread:$0]  %s2068_s5, 8192, %s65_s25, [#allocation9], %s1905_s27, %s1905_s27, %s1906_s28  }
  0x1c   :  { %s1907_s12 = smov [#allocation2]   ;;  %s1908_s14 = smov [#allocation7]  }
  0x1d   :  { %s27_s13 = sshll.u32 %s1907_s12, 4  ;;  %s50_s1 = sshll.u32 %s1908_s14, 4  ;;  %s28_s13 = int_to_ptr.vmem [resolvable:$true] %s27_s13  ;;  %s51_s1 = int_to_ptr.vmem [resolvable:$true] %s50_s1 }
  0x1e   :  { %s1799_s15 = scalar_lea.vmem %s28_s13, 128  ;;  %p1804_p11 = scmp.lt.s32.totalorder %s28_s13, %s28_s13 }
  0x1f   :  { %p1800_p10 = scmp.ne.s32.totalorder %s28_s13, %s1799_s15  ;;  %p1805_p12 = scmp.lt.s32.totalorder %s1799_s15, %s1799_s15 }
  0x21   :  { %p1806_p13 = por %p1805_p12, %p1804_p11 }
  0x23   :  { %p1807_p0 = pnand %p1806_p13, %p1800_p10 }
  0x25   :  { %1810 = shalt.err (!%p1807_p0)
}
  0x26   :  { %30 = dma.hbm_to_vmem [thread:$0]  %s2063_s0, 128, %s28_s13, [#allocation3]  }
  0x27   :  { %s1819_s18 = scalar_lea.vmem %s51_s1, 2048  ;;  %p1824_p2 = scmp.lt.s32.totalorder %s51_s1, %s51_s1 }
  0x28   :  { %p1820_p1 = scmp.ne.s32.totalorder %s51_s1, %s1819_s18  ;;  %p1825_p3 = scmp.lt.s32.totalorder %s1819_s18, %s1819_s18 }
  0x2a   :  { %p1826_p4 = por %p1825_p3, %p1824_p2 }
  0x2c   :  { %p1827_p5 = pnand %p1826_p4, %p1820_p1 }
  0x2e   :  { %1830 = shalt.err (!%p1827_p5)
}
  0x2f   :  { %s1909_s5 = smov 128   ;;  %s1910_s19 = smov 8  }
  0x30   :  { %56 = dma.hbm_to_vmem [thread:$0]  %s2066_s3, 2048, %s51_s1, [#allocation6], %s1909_s5, %s1909_s5, %s1910_s19  }
  0x31   :  { %s1911_s24 = smov [#allocation10]   ;;  %s1912_s26 = smov [#allocation11]  }
  0x32   :  { %s78_s25 = sshll.u32 %s1911_s24, 4  ;;  %s92_s27 = sshll.u32 %s1912_s26, 4  ;;  %s79_s25 = int_to_ptr.vmem [resolvable:$true] %s78_s25  ;;  %s93_s27 = int_to_ptr.vmem [resolvable:$true] %s92_s27 }
  0x33   :  { %s1839_s0 = scalar_lea.vmem %s79_s25, 4096  ;;  %p1844_p7 = scmp.lt.s32.totalorder %s79_s25, %s79_s25 }
  0x34   :  { %p1840_p6 = scmp.ne.s32.totalorder %s79_s25, %s1839_s0  ;;  %p1845_p8 = scmp.lt.s32.totalorder %s1839_s0, %s1839_s0 }
  0x36   :  { %p1846_p9 = por %p1845_p8, %p1844_p7 }
  0x38   :  { %p1847_p10 = pnand %p1846_p9, %p1840_p6 }
  0x3a   :  { %1850 = shalt.err (!%p1847_p10)
}
  0x3b   :  { %84 = dma.hbm_to_vmem [thread:$0]  %s2070_s7, 4096, %s79_s25, [#allocation9], %s1902_s20, %s1902_s20, %s1903_s21  }
  0x3c   :  { %s1859_s3 = scalar_lea.vmem %s93_s27, 1024  ;;  %p1864_p12 = scmp.lt.s32.totalorder %s93_s27, %s93_s27 }
  0x3d   :  { %p1860_p11 = scmp.ne.s32.totalorder %s93_s27, %s1859_s3  ;;  %p1865_p13 = scmp.lt.s32.totalorder %s1859_s3, %s1859_s3 }
  0x3f   :  { %p1866_p0 = por %p1865_p13, %p1864_p12 }
  0x41   :  { %p1867_p1 = pnand %p1866_p0, %p1860_p11 }
  0x43   :  { %1870 = shalt.err (!%p1867_p1)
}
  0x44   :  { %98 = dma.hbm_to_vmem [thread:$0]  %s2072_s9, 1024, %s93_s27, [#allocation12], %s1902_s20, %s1902_s20, %s1903_s21  }
  0x45   :  { %1891 = dma.done.wait [#allocation3], 128  }
  0x46   :  { %1892 = vsyncadd [#allocation3], 4294967168 }
  0x47   :  { %1893 = dma.done.wait [#allocation6], 2304  }
  0x48   :  { %1894 = vsyncadd [#allocation6], 4294964992 }
  0x49   :  { %1895 = dma.done.wait [#allocation9], 12288  }
  0x4a   :  { %1896 = vsyncadd [#allocation9], 4294955008 }
  0x4b   :  { %1897 = dma.done.wait [#allocation12], 1024  }
  0x4c   :  { %1898 = vsyncadd [#allocation12], 4294966272  ;;  %v121_v0 = vlaneseq  ;;  %vm125_vm1 = vcmask 261120   ;;  %v120_v2 = vld [vmem:[#allocation2] sm:$0xff]  ;;  %v1587_v18 = vld [vmem:[#allocation5 + $0x8] sm:$0xff]   ;;  %v1913_v19 = vmov 0.0  }
  0x4d   :  { %1543 = vmatprep.subr.bf16.mxu0 %v1913_v19  ;;  %vm1914_vm2 = vmmov 0   ;;  %v1588_v20 = vld [vmem:[#allocation5] sm:$0xff]   ;;  %v1592_v23 = vld [vmem:[#allocation7 + $0x64] ss:$8 sps:$4 sm:$0xff]   ;;  %v1594_v24 = vld [vmem:[#allocation7 + $0x60] ss:$8 sps:$4 sm:$0xff]  }
  0x4e   :  { %v122_v1 = vand.u32 127, %v121_v0  ;;  %1547 = vmatprep.mubr.msk.bf16.mxu0 %vm1914_vm2, %v1913_v19  ;;  %1544 = vmatpush3.bf16.msra.mxu0 %v1587_v18  ;;  %v1589_v21 = vld [vmem:[#allocation7 + $0x74] ss:$8 sps:$4 sm:$0xff]   ;;  %v1591_v22 = vld [vmem:[#allocation7 + $0x70] ss:$8 sps:$4 sm:$0xff]   ;;  %v1915_v46 = vmov 0  }
  0x4f   :  { %1545 = vmatprep.subr.bf16.mxu0 %v1913_v19  ;;  %331 = vmatprep.subr.bf16.mxu1 %v1589_v21  ;;  %v1595_v25 = vld [vmem:[#allocation7 + $0x54] ss:$8 sps:$4 sm:$0xff]   ;;  %v1597_v26 = vld [vmem:[#allocation7 + $0x50] ss:$8 sps:$4 sm:$0xff]   ;;  %v1598_v27 = vld [vmem:[#allocation7 + $0x44] ss:$8 sps:$4 sm:$0xff]  }
  0x50   :  { %vm123_vm0 = vcmp.lt.s32.totalorder %v122_v1, 16  ;;  %332 = vmatpush1.bf16.msra.mxu1 %v1591_v22  ;;  %v1600_v28 = vld [vmem:[#allocation7 + $0x40] ss:$8 sps:$4 sm:$0xff]   ;;  %v1601_v29 = vld [vmem:[#allocation7 + $0x34] ss:$8 sps:$4 sm:$0xff]   ;;  %363 = vmatprep.mubr.bf16.mxu1 %v1915_v46 }
  0x51   :  { %v124_v3 = vsel %vm123_vm0, %v120_v2, 0.0  ;;  %v129_v4 = vsel %vm123_vm0, 0.0, %v120_v2  ;;  %333 = vmatprep.subr.bf16.mxu1 %v1592_v23  ;;  %v1603_v30 = vld [vmem:[#allocation7 + $0x30] ss:$8 sps:$4 sm:$0xff]   ;;  %v1604_v31 = vld [vmem:[#allocation7 + $0x24] ss:$8 sps:$4 sm:$0xff]  }
  0x52   :  { %v126_v5 = vsel %vm125_vm1, %v124_v3, 0.0  ;;  %v130_v6 = vsel %vm125_vm1, %v129_v4, 0.0  ;;  %1546 = vmatpush3.bf16.msra.mxu0 %v1588_v20  ;;  %v1606_v32 = vld [vmem:[#allocation7 + $0x20] ss:$8 sps:$4 sm:$0xff]   ;;  %v1607_v42 = vld [vmem:[#allocation7 + $0x14] ss:$8 sps:$4 sm:$0xff]  }
  0x53   :  { %127 = vadd.xlane.f32.xlu0 %v126_v5  ;;  %v1609_v43 = vld [vmem:[#allocation7 + $0x10] ss:$8 sps:$4 sm:$0xff]   ;;  %v1610_v44 = vld [vmem:[#allocation7 + $0x4] ss:$8 sps:$4 sm:$0xff]   ;;  %v1612_v45 = vld [vmem:[#allocation7] ss:$8 sps:$4 sm:$0xff]  }
  0x54   :  { %334 = vmatpush1.bf16.msra.mxu1 %v1594_v24  ;;  %v1613_v47 = vld [vmem:[#allocation8 + $0xe0] ss:$16 sps:$4 sm:$0xff]   ;;  %v1615_v48 = vld [vmem:[#allocation8 + $0xe4] ss:$16 sps:$4 sm:$0xff]   ;;  %v1618_v49 = vld [vmem:[#allocation8 + $0xec] ss:$16 sps:$4 sm:$0xff]  }
  0x55   :  { %335 = vmatprep.subr.bf16.mxu1 %v1595_v25  ;;  %v1621_v50 = vld [vmem:[#allocation8 + $0xc4] ss:$16 sps:$4 sm:$0xff]   ;;  %786 = vmatprep.subr.bf16.mxu0 %v1615_v48  ;;  %v1619_v51 = vld [vmem:[#allocation8 + $0xc0] ss:$16 sps:$4 sm:$0xff]   ;;  %v1616_v21 = vld [vmem:[#allocation8 + $0xe8] ss:$16 sps:$4 sm:$0xff]  }
  0x56   :  { %v1627_v52 = vld [vmem:[#allocation8 + $0xa4] ss:$16 sps:$4 sm:$0xff]   ;;  %v1625_v53 = vld [vmem:[#allocation8 + $0xa0] ss:$16 sps:$4 sm:$0xff]   ;;  %v1624_v24 = vld [vmem:[#allocation8 + $0xcc] ss:$16 sps:$4 sm:$0xff]  }
  0x57   :  { %131 = vadd.xlane.f32.xlu0 %v130_v6  ;;  %v1633_v54 = vld [vmem:[#allocation8 + $0x84] ss:$16 sps:$4 sm:$0xff]   ;;  %v1631_v55 = vld [vmem:[#allocation8 + $0x80] ss:$16 sps:$4 sm:$0xff]   ;;  %v1622_v25 = vld [vmem:[#allocation8 + $0xc8] ss:$16 sps:$4 sm:$0xff]  }
  0x58   :  { %336 = vmatpush1.bf16.msra.mxu1 %v1597_v26  ;;  %v1639_v56 = vld [vmem:[#allocation8 + $0x64] ss:$16 sps:$4 sm:$0xff]   ;;  %v1637_v57 = vld [vmem:[#allocation8 + $0x60] ss:$16 sps:$4 sm:$0xff]   ;;  %v1630_v26 = vld [vmem:[#allocation8 + $0xac] ss:$16 sps:$4 sm:$0xff]  }
  0x59   :  { %337 = vmatprep.subr.bf16.mxu1 %v1598_v27  ;;  %v1645_v58 = vld [vmem:[#allocation8 + $0x44] ss:$16 sps:$4 sm:$0xff]   ;;  %v1643_v59 = vld [vmem:[#allocation8 + $0x40] ss:$16 sps:$4 sm:$0xff]   ;;  %v1628_v27 = vld [vmem:[#allocation8 + $0xa8] ss:$16 sps:$4 sm:$0xff]  }
  0x5a   :  { %v1651_v60 = vld [vmem:[#allocation8 + $0x24] ss:$16 sps:$4 sm:$0xff]   ;;  %v1649_v61 = vld [vmem:[#allocation8 + $0x20] ss:$16 sps:$4 sm:$0xff]   ;;  %v1690_v46 = vld [vmem:[#allocation8 + $0x16c] ss:$16 sps:$4 sm:$0xff]  }
  0x5b   :  { %v1657_v62 = vld [vmem:[#allocation8 + $0x4] ss:$16 sps:$4 sm:$0xff]   ;;  %v1655_v63 = vld [vmem:[#allocation8] ss:$16 sps:$4 sm:$0xff]   ;;  %v1696_v48 = vld [vmem:[#allocation8 + $0x14c] ss:$16 sps:$4 sm:$0xff]  }
  0x5c   :  { %338 = vmatpush1.bf16.msra.mxu1 %v1600_v28  ;;  %v1663_v1 = vld [vmem:[#allocation8 + $0x1e4] ss:$16 sps:$4 sm:$0xff]   ;;  %v1667_v4 = vld [vmem:[#allocation8 + $0x1c0] ss:$16 sps:$4 sm:$0xff]   ;;  %v1636_v28 = vld [vmem:[#allocation8 + $0x8c] ss:$16 sps:$4 sm:$0xff]  }
  0x5d   :  { %339 = vmatprep.subr.bf16.mxu1 %v1601_v29  ;;  %v1669_v3 = vld [vmem:[#allocation8 + $0x1c4] ss:$16 sps:$4 sm:$0xff]   ;;  %v1673_v6 = vld [vmem:[#allocation8 + $0x1a0] ss:$16 sps:$4 sm:$0xff]   ;;  %v1634_v29 = vld [vmem:[#allocation8 + $0x88] ss:$16 sps:$4 sm:$0xff]  }
  0x5e   :  { %v1675_v5 = vld [vmem:[#allocation8 + $0x1a4] ss:$16 sps:$4 sm:$0xff]  }
  0x60   :  { %340 = vmatpush1.bf16.msra.mxu1 %v1603_v30  ;;  %v1642_v30 = vld [vmem:[#allocation8 + $0x6c] ss:$16 sps:$4 sm:$0xff]  }
  0x61   :  { %341 = vmatprep.subr.bf16.mxu1 %v1604_v31  ;;  %v1640_v31 = vld [vmem:[#allocation8 + $0x68] ss:$16 sps:$4 sm:$0xff]  }
  0x64   :  { %342 = vmatpush1.bf16.msra.mxu1 %v1606_v32  ;;  %v1648_v32 = vld [vmem:[#allocation8 + $0x4c] ss:$16 sps:$4 sm:$0xff]  }
  0x65   :  { %343 = vmatprep.subr.bf16.mxu1 %v1607_v42  ;;  %v1678_v42 = vld [vmem:[#allocation8 + $0x1ac] ss:$16 sps:$4 sm:$0xff]  }
  0x68   :  { %344 = vmatpush1.bf16.msra.mxu1 %v1609_v43  ;;  %v1676_v43 = vld [vmem:[#allocation8 + $0x1a8] ss:$16 sps:$4 sm:$0xff]  }
  0x69   :  { %345 = vmatprep.subr.bf16.mxu1 %v1610_v44  ;;  %v1684_v44 = vld [vmem:[#allocation8 + $0x18c] ss:$16 sps:$4 sm:$0xff]  }
  0x6c   :  { %346 = vmatpush1.bf16.msra.mxu1 %v1612_v45  ;;  %v1682_v45 = vld [vmem:[#allocation8 + $0x188] ss:$16 sps:$4 sm:$0xff]  }
  0x6d   :  { %827 = vmatprep.subr.bf16.mxu1 %v1618_v49  ;;  %v1694_v49 = vld [vmem:[#allocation8 + $0x148] ss:$16 sps:$4 sm:$0xff]  }
  0xdc   :  { %v128_v7 = vpop.xlane.xlu0 %127 }
  0xdd   :  { %v133_v9 = vmul.f32 0.0625, %v128_v7  ;;  %v1681_v7 = vld [vmem:[#allocation8 + $0x184] ss:$16 sps:$4 sm:$0xff]  }
  0xe0   :  { %v132_v8 = vpop.xlane.xlu0 %131 }
  0xe1   :  { %v134_v10 = vmul.f32 0.0625, %v132_v8  ;;  %v1679_v8 = vld [vmem:[#allocation8 + $0x180] ss:$16 sps:$4 sm:$0xff]  }
  0xe3   :  { %v135_v11 = vsel %vm123_vm0, %v133_v9, %v134_v10  ;;  %v1687_v9 = vld [vmem:[#allocation8 + $0x164] ss:$16 sps:$4 sm:$0xff]   ;;  %v1685_v10 = vld [vmem:[#allocation8 + $0x160] ss:$16 sps:$4 sm:$0xff]  }
  0xe4   :  { %v136_v12 = vsub.f32 %v120_v2, %v135_v11  ;;  %v1661_v2 = vld [vmem:[#allocation8 + $0x1e0] ss:$16 sps:$4 sm:$0xff]   ;;  %v1693_v11 = vld [vmem:[#allocation8 + $0x144] ss:$16 sps:$4 sm:$0xff]  }
  0xe6   :  { %v137_v13 = vmul.f32 %v136_v12, %v136_v12 }
  0xe8   :  { %v138_v14 = vsel %vm123_vm0, %v137_v13, 0.0  ;;  %v142_v16 = vsel %vm123_vm0, 0.0, %v137_v13  ;;  %v1361_v13 = vld [vmem:[%s2065_s2] ss:$0 sm:$0xff] }
  0xe9   :  { %v139_v15 = vsel %vm125_vm1, %v138_v14, 0.0  ;;  %v143_v17 = vsel %vm125_vm1, %v142_v16, 0.0 }
  0xea   :  { %140 = vadd.xlane.f32.xlu1 %v139_v15 }
  0xee   :  { %144 = vadd.xlane.f32.xlu1 %v143_v17 }
 0x173   :  { %v141_v33 = vpop.xlane.xlu1 %140 }
 0x174   :  { %v146_v35 = vmul.f32 0.0625, %v141_v33  ;;  %v1646_v33 = vld [vmem:[#allocation8 + $0x48] ss:$16 sps:$4 sm:$0xff]  }
 0x177   :  { %v145_v34 = vpop.xlane.xlu1 %144 }
 0x178   :  { %v147_v36 = vmul.f32 0.0625, %v145_v34  ;;  %v1654_v34 = vld [vmem:[#allocation8 + $0x2c] ss:$16 sps:$4 sm:$0xff]  }
 0x17a   :  { %v148_v37 = vsel %vm123_vm0, %v146_v35, %v147_v36  ;;  %v1652_v35 = vld [vmem:[#allocation8 + $0x28] ss:$16 sps:$4 sm:$0xff]   ;;  %v1660_v36 = vld [vmem:[#allocation8 + $0xc] ss:$16 sps:$4 sm:$0xff]  }
 0x17b   :  { %v149_v38 = vadd.f32 1e-05, %v148_v37  ;;  %v1658_v37 = vld [vmem:[#allocation8 + $0x8] ss:$16 sps:$4 sm:$0xff]  }
 0x17d   :  { %1749 = vrsqrt.f32 %v149_v38  ;;  %v1666_v38 = vld [vmem:[#allocation8 + $0x1ec] ss:$16 sps:$4 sm:$0xff]  }
 0x18a   :  { %v1750_v39 = vpop.eup %1749 }
 0x18b   :  { %v151_v40 = vmul.f32 %v1750_v39, %v136_v12  ;;  %v1691_v12 = vld [vmem:[#allocation8 + $0x140] ss:$16 sps:$4 sm:$0xff]   ;;  %v1664_v39 = vld [vmem:[#allocation8 + $0x1e8] ss:$16 sps:$4 sm:$0xff]  }
 0x18d   :  { %v152_v41 = vpack.c.bf16 %v151_v40, %v151_v40  ;;  %v1672_v40 = vld [vmem:[#allocation8 + $0x1cc] ss:$16 sps:$4 sm:$0xff]  }
 0x18f   :  { %1548 = vmatmul.mubr.msk.bf16.vlgmr.msra.gmra.mxu0 %vm125_vm1, %v152_v41  ;;  %v1670_v41 = vld [vmem:[#allocation8 + $0x1c8] ss:$16 sps:$4 sm:$0xff]  }
 0x190   :  { %787 = vmatpush1.bf16.msra.mxu0 %v1613_v47  ;;  %v1688_v47 = vld [vmem:[#allocation8 + $0x168] ss:$16 sps:$4 sm:$0xff]  }
 0x191   :  { %788 = vmatprep.subr.bf16.mxu0 %v1621_v50  ;;  %v1699_v50 = vld [vmem:[#allocation8 + $0x124] ss:$16 sps:$4 sm:$0xff]  }
 0x194   :  { %789 = vmatpush1.bf16.msra.mxu0 %v1619_v51  ;;  %v1702_v51 = vld [vmem:[#allocation8 + $0x12c] ss:$16 sps:$4 sm:$0xff]  }
 0x195   :  { %790 = vmatprep.subr.bf16.mxu0 %v1627_v52  ;;  %v1697_v52 = vld [vmem:[#allocation8 + $0x120] ss:$16 sps:$4 sm:$0xff]  }
 0x198   :  { %791 = vmatpush1.bf16.msra.mxu0 %v1625_v53  ;;  %v1700_v53 = vld [vmem:[#allocation8 + $0x128] ss:$16 sps:$4 sm:$0xff]  }
 0x199   :  { %792 = vmatprep.subr.bf16.mxu0 %v1633_v54  ;;  %v1705_v54 = vld [vmem:[#allocation8 + $0x104] ss:$16 sps:$4 sm:$0xff]  }
 0x19c   :  { %793 = vmatpush1.bf16.msra.mxu0 %v1631_v55  ;;  %v1708_v55 = vld [vmem:[#allocation8 + $0x10c] ss:$16 sps:$4 sm:$0xff]  }
 0x19d   :  { %794 = vmatprep.subr.bf16.mxu0 %v1639_v56  ;;  %v1703_v56 = vld [vmem:[#allocation8 + $0x100] ss:$16 sps:$4 sm:$0xff]  }
 0x1a0   :  { %795 = vmatpush1.bf16.msra.mxu0 %v1637_v57  ;;  %v1706_v57 = vld [vmem:[#allocation8 + $0x108] ss:$16 sps:$4 sm:$0xff]  }
 0x1a1   :  { %796 = vmatprep.subr.bf16.mxu0 %v1645_v58  ;;  %v1709_v58 = vld [vmem:[#allocation10 + $0x78] sm:$0xff]  }
 0x1a4   :  { %797 = vmatpush1.bf16.msra.mxu0 %v1643_v59  ;;  %v1710_v59 = vld [vmem:[#allocation10 + $0xf8] sm:$0xff]  }
 0x1a5   :  { %798 = vmatprep.subr.bf16.mxu0 %v1651_v60  ;;  %v2024_v60 = vshrl.u32 %v121_v0, 7 }
 0x1a8   :  { %799 = vmatpush1.bf16.msra.mxu0 %v1649_v61  ;;  %v243_v61 = vsub.s32 0, %v2024_v60 }
 0x1a9   :  { %800 = vmatprep.subr.bf16.mxu0 %v1657_v62  ;;  %v239_v62 = vld [vmem:[%s2067_s4] sm:$0x3] }
 0x1ac   :  { %801 = vmatpush1.bf16.msra.mxu0 %v1655_v63  ;;  %v247_v63 = vsub.s32 1, %v2024_v60 }
 0x1ad   :  { %802 = vmatprep.subr.bf16.mxu0 %v1663_v1  ;;  %v244_v1 = vrot.slane %v239_v62, %v243_v61 }
 0x1b0   :  { %803 = vmatpush2.bf16.msra.mxu0 %v1661_v2  ;;  %v248_v2 = vrot.slane %v239_v62, %v247_v63 }
 0x1b1   :  { %804 = vmatprep.subr.bf16.mxu0 %v1669_v3 }
 0x1b4   :  { %805 = vmatpush2.bf16.msra.mxu0 %v1667_v4 }
 0x1b5   :  { %806 = vmatprep.subr.bf16.mxu0 %v1675_v5 }
 0x1b8   :  { %807 = vmatpush2.bf16.msra.mxu0 %v1673_v6 }
 0x1b9   :  { %808 = vmatprep.subr.bf16.mxu0 %v1681_v7 }
 0x1bc   :  { %809 = vmatpush2.bf16.msra.mxu0 %v1679_v8 }
 0x1bd   :  { %810 = vmatprep.subr.bf16.mxu0 %v1687_v9 }
 0x1c0   :  { %811 = vmatpush2.bf16.msra.mxu0 %v1685_v10 }
 0x1c1   :  { %812 = vmatprep.subr.bf16.mxu0 %v1693_v11 }
 0x1c4   :  { %813 = vmatpush2.bf16.msra.mxu0 %v1691_v12 }
 0x1c5   :  { %814 = vmatprep.subr.bf16.mxu0 %v1699_v50 }
 0x1c8   :  { %815 = vmatpush2.bf16.msra.mxu0 %v1697_v52 }
 0x1c9   :  { %816 = vmatprep.subr.bf16.mxu0 %v1705_v54 }
 0x1cc   :  { %817 = vmatpush2.bf16.msra.mxu0 %v1703_v56 }
 0x1cd   :  { %1490 = vmatprep.subr.bf16.mxu0 %v1709_v58 }
 0x24f   :  { %v213_v14 = vpop.f32.mrf.mxu0 }
 0x250   :  { %v214_v15 = vadd.f32 %v1361_v13, %v213_v14  ;;  %v1711_v13 = vld [vmem:[#allocation10 + $0x38] sm:$0xff]  }
 0x251   :  { %v1549_v16 = vpop.f32.mrf.mxu0  ;;  %v1712_v14 = vld [vmem:[#allocation10 + $0xb8] sm:$0xff]  }
 0x252   :  { %vm219_vm3 = vcmp.gt.f32.partialorder %v214_v15, 0.0  ;;  %v220_v17 = vmul.f32 0.01, %v214_v15  ;;  %v1713_v16 = vld [vmem:[#allocation10 + $0x70] sm:$0xff]  }
 0x253   :  { %v216_v18 = vpop.f32.mrf.mxu0 }
 0x254   :  { %v221_v20 = vsel %vm219_vm3, %v214_v15, %v220_v17  ;;  %v1714_v17 = vld [vmem:[#allocation10 + $0xf0] sm:$0xff]  }
 0x255   :  { %v1550_v22 = vpop.f32.mrf.mxu0  ;;  %v222_v23 = vpack.c.bf16 %v221_v20, %v221_v20  ;;  %v1715_v18 = vld [vmem:[#allocation10 + $0x30] sm:$0xff]  }
 0x256   :  { %v1716_v20 = vld [vmem:[#allocation10 + $0xb0] sm:$0xff]   ;;  %v1718_v22 = vld [vmem:[#allocation10 + $0xe8] sm:$0xff]  }
 0x257   :  { %364 = vmatmul.mubr.bf16.vlgmr.msra.gmra.mxu1 %v222_v23  ;;  %v1719_v23 = vld [vmem:[#allocation10 + $0x28] sm:$0xff]  }
 0x258   :  { %828 = vmatpush1.bf16.msra.mxu1 %v1616_v21  ;;  %v1717_v21 = vld [vmem:[#allocation10 + $0x68] sm:$0xff]  }
 0x259   :  { %829 = vmatprep.subr.bf16.mxu1 %v1624_v24  ;;  %v1720_v24 = vld [vmem:[#allocation10 + $0xa8] sm:$0xff]  }
 0x25c   :  { %830 = vmatpush1.bf16.msra.mxu1 %v1622_v25  ;;  %v1721_v25 = vld [vmem:[#allocation10 + $0x60] sm:$0xff]  }
 0x25d   :  { %831 = vmatprep.subr.bf16.mxu1 %v1630_v26  ;;  %v1722_v26 = vld [vmem:[#allocation10 + $0xe0] sm:$0xff]  }
 0x260   :  { %832 = vmatpush1.bf16.msra.mxu1 %v1628_v27  ;;  %v1723_v27 = vld [vmem:[#allocation10 + $0x20] sm:$0xff]  }
 0x261   :  { %833 = vmatprep.subr.bf16.mxu1 %v1636_v28  ;;  %v1724_v28 = vld [vmem:[#allocation10 + $0xa0] sm:$0xff]  }
 0x264   :  { %834 = vmatpush1.bf16.msra.mxu1 %v1634_v29  ;;  %v1725_v29 = vld [vmem:[#allocation10 + $0x58] sm:$0xff]  }
 0x265   :  { %835 = vmatprep.subr.bf16.mxu1 %v1642_v30  ;;  %v1726_v30 = vld [vmem:[#allocation10 + $0xd8] sm:$0xff]  }
 0x268   :  { %836 = vmatpush1.bf16.msra.mxu1 %v1640_v31  ;;  %v1727_v31 = vld [vmem:[#allocation10 + $0x18] sm:$0xff]  }
 0x269   :  { %837 = vmatprep.subr.bf16.mxu1 %v1648_v32  ;;  %v1728_v32 = vld [vmem:[#allocation10 + $0x98] sm:$0xff]  }
 0x26c   :  { %838 = vmatpush1.bf16.msra.mxu1 %v1646_v33  ;;  %v1729_v33 = vld [vmem:[#allocation10 + $0x50] sm:$0xff]  }
 0x26d   :  { %839 = vmatprep.subr.bf16.mxu1 %v1654_v34  ;;  %v1730_v34 = vld [vmem:[#allocation10 + $0xd0] sm:$0xff]  }
 0x270   :  { %840 = vmatpush1.bf16.msra.mxu1 %v1652_v35  ;;  %v1731_v35 = vld [vmem:[#allocation10 + $0x10] sm:$0xff]  }
 0x271   :  { %841 = vmatprep.subr.bf16.mxu1 %v1660_v36  ;;  %v1732_v36 = vld [vmem:[#allocation10 + $0x90] sm:$0xff]  }
 0x274   :  { %842 = vmatpush1.bf16.msra.mxu1 %v1658_v37  ;;  %v1733_v37 = vld [vmem:[#allocation10 + $0x48] sm:$0xff]  }
 0x275   :  { %843 = vmatprep.subr.bf16.mxu1 %v1666_v38  ;;  %v1734_v38 = vld [vmem:[#allocation10 + $0xc8] sm:$0xff]  }
 0x278   :  { %844 = vmatpush2.bf16.msra.mxu1 %v1664_v39  ;;  %v1735_v39 = vld [vmem:[#allocation10 + $0x8] sm:$0xff]  }
 0x279   :  { %845 = vmatprep.subr.bf16.mxu1 %v1672_v40  ;;  %v1736_v40 = vld [vmem:[#allocation10 + $0x88] sm:$0xff]  }
 0x27c   :  { %846 = vmatpush2.bf16.msra.mxu1 %v1670_v41  ;;  %v1737_v41 = vld [vmem:[#allocation10 + $0x40] sm:$0xff]  }
 0x27d   :  { %847 = vmatprep.subr.bf16.mxu1 %v1678_v42  ;;  %v1738_v42 = vld [vmem:[#allocation10 + $0xc0] sm:$0xff]  }
 0x280   :  { %848 = vmatpush2.bf16.msra.mxu1 %v1676_v43  ;;  %v1739_v43 = vld [vmem:[#allocation10] sm:$0xff]  }
 0x281   :  { %849 = vmatprep.subr.bf16.mxu1 %v1684_v44  ;;  %v1740_v44 = vld [vmem:[#allocation10 + $0x80] sm:$0xff]  }
 0x284   :  { %850 = vmatpush2.bf16.msra.mxu1 %v1682_v45  ;;  %v456_v45 = vsub.s32 2, %v2024_v60 }
 0x285   :  { %851 = vmatprep.subr.bf16.mxu1 %v1690_v46  ;;  %v444_v46 = vld [vmem:[%s2069_s6] sm:$0xf] }
 0x286   :  { %v453_v52 = vrot.slane %v444_v46, %v247_v63 }
 0x288   :  { %852 = vmatpush2.bf16.msra.mxu1 %v1688_v47  ;;  %v460_v47 = vsub.s32 3, %v2024_v60 }
 0x289   :  { %853 = vmatprep.subr.bf16.mxu1 %v1696_v48  ;;  %v449_v48 = vrot.slane %v444_v46, %v243_v61 }
 0x28c   :  { %854 = vmatpush2.bf16.msra.mxu1 %v1694_v49  ;;  %v457_v49 = vrot.slane %v444_v46, %v456_v45 }
 0x28d   :  { %855 = vmatprep.subr.bf16.mxu1 %v1702_v51 }
 0x290   :  { %856 = vmatpush2.bf16.msra.mxu1 %v1700_v53  ;;  %v461_v53 = vrot.slane %v444_v46, %v460_v47 }
 0x291   :  { %857 = vmatprep.subr.bf16.mxu1 %v1708_v55 }
 0x294   :  { %858 = vmatpush2.bf16.msra.mxu1 %v1706_v57 }
 0x295   :  { %1512 = vmatprep.subr.bf16.mxu1 %v1710_v59 }
 0x317   :  { %v365_v3 = vpop.f32.mrf.mxu1 }
 0x318   :  { %v366_v4 = vadd.f32 %v365_v3, %v244_v1 }
 0x319   :  { %v367_v5 = vpop.f32.mrf.mxu1 }
 0x31a   :  { %vm372_vm4 = vcmp.gt.f32.partialorder %v366_v4, 0.0  ;;  %v374_v0 = vmul.f32 0.01, %v366_v4  ;;  %v368_v6 = vadd.f32 %v367_v5, %v248_v2 }
 0x31b   :  { %v369_v7 = vpop.f32.mrf.mxu1 }
 0x31c   :  { %vm373_vm5 = vcmp.gt.f32.partialorder %v368_v6, 0.0  ;;  %v375_v8 = vmul.f32 0.01, %v368_v6  ;;  %v376_v9 = vsel %vm372_vm4, %v366_v4, %v374_v0 }
 0x31d   :  { %v370_v10 = vpop.f32.mrf.mxu1  ;;  %v378_v15 = vpack.c.bf16 %v376_v9, %v376_v9  ;;  %v1741_v9 = vld [vmem:[#allocation11 + $0x38] sm:$0xff]  }
 0x31e   :  { %v377_v11 = vsel %vm373_vm5, %v368_v6, %v375_v8 }
 0x31f   :  { %v379_v12 = vpack.c.bf16 %v377_v11, %v377_v11 }
 0x321   :  { %818 = vmatprep.mubr.bf16.mxu0 %v379_v12  ;;  %859 = vmatprep.mubr.bf16.mxu1 %v379_v12 }
 0x322   :  { %819 = vmatmul.mubr.bf16.vlgmr.msra.gmra.mxu0 %v378_v15  ;;  %860 = vmatmul.mubr.bf16.vlgmr.msra.gmra.mxu1 %v378_v15  ;;  %v1744_v15 = vld [vmem:[#allocation11 + $0x20] sm:$0xff]  }
 0x323   :  { %1491 = vmatpush3.bf16.msra.mxu0 %v1711_v13  ;;  %1513 = vmatpush3.bf16.msra.mxu1 %v1712_v14  ;;  %v1742_v13 = vld [vmem:[#allocation11 + $0x30] sm:$0xff]   ;;  %v1743_v14 = vld [vmem:[#allocation11 + $0x28] sm:$0xff]  }
 0x324   :  { %1492 = vmatprep.subr.bf16.mxu0 %v1713_v16  ;;  %1514 = vmatprep.subr.bf16.mxu1 %v1714_v17  ;;  %v1745_v16 = vld [vmem:[#allocation11 + $0x18] sm:$0xff]   ;;  %v1746_v17 = vld [vmem:[#allocation11 + $0x10] sm:$0xff]  }
 0x327   :  { %1493 = vmatpush3.bf16.msra.mxu0 %v1715_v18  ;;  %1515 = vmatpush3.bf16.msra.mxu1 %v1716_v20  ;;  %v1747_v18 = vld [vmem:[#allocation11 + $0x8] sm:$0xff]   ;;  %v1748_v20 = vld [vmem:[#allocation11] sm:$0xff]  }
 0x328   :  { %1494 = vmatprep.subr.bf16.mxu0 %v1717_v21  ;;  %1516 = vmatprep.subr.bf16.mxu1 %v1718_v22 }
 0x32b   :  { %1495 = vmatpush3.bf16.msra.mxu0 %v1719_v23  ;;  %1517 = vmatpush3.bf16.msra.mxu1 %v1720_v24  ;;  %v1445_v23 = vld [vmem:[%s2071_s8] ss:$0 sm:$0xff]  ;;  %s1916_s8 = smov [#allocation13]  }
 0x32c   :  { %1496 = vmatprep.subr.bf16.mxu0 %v1721_v25  ;;  %1518 = vmatprep.subr.bf16.mxu1 %v1722_v26  ;;  %s1349_s15 = sshll.u32 %s1916_s8, 4  ;;  %s1350_s15 = int_to_ptr.vmem [resolvable:$true] %s1349_s15 }
 0x32d   :  { %s1871_s16 = scalar_lea.vmem %s1350_s15, 128  ;;  %p1876_p3 = scmp.lt.s32.totalorder %s1350_s15, %s1350_s15 }
 0x32e   :  { %p1872_p2 = scmp.ne.s32.totalorder %s1350_s15, %s1871_s16  ;;  %p1877_p4 = scmp.lt.s32.totalorder %s1871_s16, %s1871_s16 }
 0x32f   :  { %1497 = vmatpush3.bf16.msra.mxu0 %v1723_v27  ;;  %1519 = vmatpush3.bf16.msra.mxu1 %v1724_v28 }
 0x330   :  { %1498 = vmatprep.subr.bf16.mxu0 %v1725_v29  ;;  %1520 = vmatprep.subr.bf16.mxu1 %v1726_v30  ;;  %p1878_p5 = por %p1877_p4, %p1876_p3 }
 0x332   :  { %p1879_p6 = pnand %p1878_p5, %p1872_p2 }
 0x333   :  { %1499 = vmatpush3.bf16.msra.mxu0 %v1727_v31  ;;  %1521 = vmatpush3.bf16.msra.mxu1 %v1728_v32 }
 0x334   :  { %1500 = vmatprep.subr.bf16.mxu0 %v1729_v33  ;;  %1522 = vmatprep.subr.bf16.mxu1 %v1730_v34 }
 0x337   :  { %1501 = vmatpush3.bf16.msra.mxu0 %v1731_v35  ;;  %1523 = vmatpush3.bf16.msra.mxu1 %v1732_v36  ;;  %v1478_v36 = vld [vmem:[%s2073_s10] ss:$0 sm:$0xff] }
 0x338   :  { %1502 = vmatprep.subr.bf16.mxu0 %v1733_v37  ;;  %1524 = vmatprep.subr.bf16.mxu1 %v1734_v38 }
 0x33b   :  { %1503 = vmatpush3.bf16.msra.mxu0 %v1735_v39  ;;  %1525 = vmatpush3.bf16.msra.mxu1 %v1736_v40 }
 0x33c   :  { %1504 = vmatprep.subr.bf16.mxu0 %v1737_v41  ;;  %1526 = vmatprep.subr.bf16.mxu1 %v1738_v42 }
 0x33f   :  { %1505 = vmatpush3.bf16.msra.mxu0 %v1739_v43  ;;  %1527 = vmatpush3.bf16.msra.mxu1 %v1740_v44 }
 0x340   :  { %1551 = vmatprep.subr.bf16.mxu0 %v1913_v19 }
 0x3e2   :  { %v820_v50 = vpop.f32.mrf.mxu0  ;;  %v861_v51 = vpop.f32.mrf.mxu1 }
 0x3e3   :  { %v821_v54 = vadd.f32 %v820_v50, %v449_v48  ;;  %v862_v55 = vadd.f32 %v861_v51, %v457_v49 }
 0x3e4   :  { %v822_v56 = vpop.f32.mrf.mxu0  ;;  %v863_v57 = vpop.f32.mrf.mxu1 }
 0x3e5   :  { %v872_v58 = vmul.f32 0.01, %v821_v54  ;;  %vm868_vm6 = vcmp.gt.f32.partialorder %v821_v54, 0.0  ;;  %v874_v59 = vmul.f32 0.01, %v862_v55  ;;  %v823_v62 = vadd.f32 %v822_v56, %v453_v52 }
 0x3e6   :  { %v864_v1 = vadd.f32 %v863_v57, %v461_v53  ;;  %v824_v2 = vpop.f32.mrf.mxu0  ;;  %v865_v3 = vpop.f32.mrf.mxu1  ;;  %vm870_vm7 = vcmp.gt.f32.partialorder %v862_v55, 0.0 }
 0x3e7   :  { %vm869_vm8 = vcmp.gt.f32.partialorder %v823_v62, 0.0  ;;  %v873_v61 = vmul.f32 0.01, %v823_v62  ;;  %v876_v0 = vsel %vm868_vm6, %v821_v54, %v872_v58  ;;  %v878_v63 = vsel %vm870_vm7, %v862_v55, %v874_v59 }
 0x3e8   :  { %v825_v4 = vpop.f32.mrf.mxu0  ;;  %v866_v5 = vpop.f32.mrf.mxu1  ;;  %vm871_vm9 = vcmp.gt.f32.partialorder %v864_v1, 0.0  ;;  %v875_v60 = vmul.f32 0.01, %v864_v1  ;;  %v880_v10 = vpack.c.bf16 %v876_v0, %v876_v0  ;;  %v882_v12 = vpack.c.bf16 %v878_v63, %v878_v63 }
 0x3e9   :  { %v877_v6 = vsel %vm869_vm8, %v823_v62, %v873_v61 }
 0x3ea   :  { %v881_v7 = vpack.c.bf16 %v877_v6, %v877_v6  ;;  %v879_v8 = vsel %vm871_vm9, %v864_v1, %v875_v60 }
 0x3eb   :  { %v883_v11 = vpack.c.bf16 %v879_v8, %v879_v8 }
 0x3ec   :  { %1179 = vmatprep.mubr.bf16.mxu0 %v881_v7 }
 0x3ed   :  { %1219 = vmatprep.mubr.bf16.mxu1 %v883_v11  ;;  %1180 = vmatmul.mubr.bf16.vlgmr.msra.gmra.mxu0 %v880_v10 }
 0x3ee   :  { %1220 = vmatmul.mubr.bf16.vlgmr.msra.gmra.mxu1 %v882_v12  ;;  %1552 = vmatpush3.bf16.msra.mxu0 %v1741_v9 }
 0x3ef   :  { %1553 = vmatprep.subr.bf16.mxu0 %v1913_v19  ;;  %1567 = vmatprep.mubr.msk.bf16.mxu0 %vm1914_vm2, %v1913_v19 }
 0x3f2   :  { %1554 = vmatpush3.bf16.msra.mxu0 %v1742_v13 }
 0x3f3   :  { %1555 = vmatprep.subr.bf16.mxu0 %v1913_v19 }
 0x3f6   :  { %1556 = vmatpush3.bf16.msra.mxu0 %v1743_v14 }
 0x3f7   :  { %1557 = vmatprep.subr.bf16.mxu0 %v1913_v19 }
 0x3fa   :  { %1558 = vmatpush3.bf16.msra.mxu0 %v1744_v15 }
 0x3fb   :  { %1559 = vmatprep.subr.bf16.mxu0 %v1913_v19 }
 0x3fe   :  { %1560 = vmatpush3.bf16.msra.mxu0 %v1745_v16 }
 0x3ff   :  { %1561 = vmatprep.subr.bf16.mxu0 %v1913_v19 }
 0x402   :  { %1562 = vmatpush3.bf16.msra.mxu0 %v1746_v17 }
 0x403   :  { %1563 = vmatprep.subr.bf16.mxu0 %v1913_v19 }
 0x406   :  { %1564 = vmatpush3.bf16.msra.mxu0 %v1747_v18 }
 0x407   :  { %1565 = vmatprep.subr.bf16.mxu0 %v1913_v19 }
 0x40a   :  { %1566 = vmatpush3.bf16.msra.mxu0 %v1748_v20 }
 0x4ad   :  { %v1506_v21 = vpop.f32.mrf.mxu0 }
 0x4ae   :  { %v1528_v22 = vpop.f32.mrf.mxu1 }
 0x4af   :  { %v1507_v24 = vpop.f32.mrf.mxu0 }
 0x4b0   :  { %v1508_v25 = vadd.f32 %v1507_v24, %v1506_v21  ;;  %v1529_v26 = vpop.f32.mrf.mxu1 }
 0x4b1   :  { %v1509_v27 = vpop.f32.mrf.mxu0  ;;  %v1530_v29 = vadd.f32 %v1529_v26, %v1528_v22 }
 0x4b2   :  { %v1182_v28 = vadd.f32 %v1508_v25, %v1445_v23  ;;  %v1531_v30 = vpop.f32.mrf.mxu1 }
 0x4b3   :  { %v1510_v31 = vpop.f32.mrf.mxu0 }
 0x4b4   :  { %v1222_v32 = vadd.f32 %v1530_v29, %v1182_v28  ;;  %v1532_v33 = vpop.f32.mrf.mxu1 }
 0x4b6   :  { %vm1227_vm10 = vcmp.gt.f32.partialorder %v1222_v32, 0.0  ;;  %v1228_v19 = vmul.f32 0.01, %v1222_v32 }
 0x4b8   :  { %v1229_v34 = vsel %vm1227_vm10, %v1222_v32, %v1228_v19 }
 0x4b9   :  { %v1230_v35 = vpack.c.bf16 %v1229_v34, %v1229_v34 }
 0x4bb   :  { %1568 = vmatmul.mubr.bf16.vlgmr.msra.gmra.mxu0 %v1230_v35 }
 0x57b   :  { %v1336_v37 = vpop.f32.mrf.mxu0 }
 0x57c   :  { %v1337_v38 = vadd.f32 %v1478_v36, %v1336_v37 }
 0x57d   :  { %v1569_v39 = vpop.f32.mrf.mxu0 }
 0x57e   :  { %1342 = vst [vmem:[#allocation13] sm:$0xff] %v1337_v38 }
 0x57f   :  { %v1339_v40 = vpop.f32.mrf.mxu0 }
 0x580   :  { %1882 = shalt.err (!%p1879_p6)
}
 0x581   :  { %1352 = dma.vmem_to_hbm [thread:$0]  %s1350_s15, 128, %s2074_s11, [#allocation4]   ;;  %v1570_v41 = vpop.f32.mrf.mxu0 }
 0x582   :  { %1899 = dma.done.wait [#allocation4], 128  }
 0x583   :  { %1900 = vsyncadd [#allocation4], 4294967168 }
 0x584   :  { %1356 = vsyncpa [#allocation3], 1 }
 0x585   :  { %1357 = vsyncpa [#allocation6], 1 }
 0x586   :  { %1358 = vsyncpa [#allocation9], 1 }
 0x587   :  { %1359 = vsyncpa [#allocation12], 1 }
 0x588   :  { %1360 = vsyncpa [#allocation4], 1 }

</bundles_post_ra>
